<compile_context>
chip_gen: v6e
topology: v6e:2x2x1
jax: 0.10.0
libtpu: 0.0.40
codegen_flags: <defaults>
</compile_context>

<pallas_src>
import functools

import jax
import jax.numpy as jnp
import numpy as np
from jax.experimental import pallas as pl
from jax.experimental.pallas import tpu as pltpu

KSIZE = 5
SIGMA = 1.2
LEVELS = 4


def _gaussian_1d(kernel_size=KSIZE, sigma=SIGMA):
    """Same 1-D gaussian construction as the PyTorch module (float32)."""
    x = np.arange(kernel_size, dtype=np.float32) - (kernel_size - 1) / 2.0
    k1d = np.exp(-(x ** 2) / (2.0 * sigma ** 2))
    return (k1d / k1d.sum()).astype(np.float32)


def _downsample_matrix(n):
    """(n//2, n) banded matrix of the fused blur + 2x-pool stride-2 filter.

    Applying it along one axis equals: 5-tap gaussian conv with zero padding 2,
    followed by mean-pooling pairs (kernel 2, stride 2).  Out-of-range taps are
    dropped, which reproduces F.conv2d's zero padding exactly.
    """
    k1d = _gaussian_1d()
    # Fused taps: w6[a] = 0.5 * (k1d[a] + k1d[a-1]),  a in [0, 6).
    w6 = 0.5 * np.convolve(k1d, np.ones(2, dtype=np.float32))
    m = np.zeros((n // 2, n), dtype=np.float32)
    for p in range(n // 2):
        for a in range(KSIZE + 1):
            y = 2 * p + a - 2
            if 0 <= y < n:
                m[p, y] = w6[a]
    return m


def _pyramid_kernel(*refs, num_down):
    """refs = (x, Vt_1, Hm_1, ..., Vt_L, Hm_L, out_1, ..., out_L)."""
    x_ref = refs[0]
    mat_refs = refs[1:1 + 2 * num_down]
    out_refs = refs[1 + 2 * num_down:]

    cur = x_ref[0].astype(jnp.float32)                     # (h, w) plane
    for l in range(num_down):
        vt = mat_refs[2 * l][...]                          # (h/2, h)
        hm = mat_refs[2 * l + 1][...]                      # (w, w/2)
        tmp = jnp.dot(vt, cur, preferred_element_type=jnp.float32)   # (h/2, w)
        cur = jnp.dot(tmp, hm, preferred_element_type=jnp.float32)   # (h/2, w/2)
        out_refs[l][0] = cur.astype(out_refs[l].dtype)


def enhanced_pyramid_layer(x_nchw, levels=LEVELS):
    """Forward pass of EnhancedPyramidLayer.  x: (N, C, H, W).  Returns list."""
    N, C, H, W = x_nchw.shape
    if levels <= 1:
        return [x_nchw]
    num_down = levels - 1
    div = 1 << num_down
    assert H % div == 0 and W % div == 0, (
        "spatial dims must be divisible by 2**(levels-1)")

    planes = x_nchw.reshape(N * C, H, W)      # free reshape; (N, C) -> grid

    inputs = [planes]
    in_specs = [pl.BlockSpec((1, H, W), lambda n: (n, 0, 0))]
    for l in range(num_down):
        h, w = H >> l, W >> l
        vt = jnp.asarray(_downsample_matrix(h))            # (h/2, h)
        hm = jnp.asarray(_downsample_matrix(w).T)          # (w, w/2)
        inputs += [vt, hm]
        in_specs += [pl.BlockSpec((h // 2, h), lambda n: (0, 0)),
                     pl.BlockSpec((w, w // 2), lambda n: (0, 0))]

    out_shapes = []
    out_specs = []
    for l in range(1, levels):
        ho, wo = H >> l, W >> l
        out_shapes.append(jax.ShapeDtypeStruct((N * C, ho, wo), x_nchw.dtype))
        out_specs.append(pl.BlockSpec((1, ho, wo), lambda n: (n, 0, 0)))

    outs = pl.pallas_call(
        functools.partial(_pyramid_kernel, num_down=num_down),
        grid=(N * C,),
        in_specs=in_specs,
        out_specs=out_specs,
        out_shape=tuple(out_shapes),
        compiler_params=pltpu.CompilerParams(
            dimension_semantics=("parallel",)),
    )(*inputs)

    pyramid = [x_nchw]
    for l, o in enumerate(outs, start=1):
        pyramid.append(o.reshape(N, C, H >> l, W >> l))
    return pyramid


def _reference_pyramid(x_nchw, levels=LEVELS):
    """Pure-JAX reference: depthwise 5x5 gaussian (pad=2) + 2x2 avg pool."""
    k1d = _gaussian_1d()
    k2d = jnp.asarray(np.outer(k1d, k1d), dtype=jnp.float32)
    pyramid = [x_nchw]
    cur = x_nchw
    for _ in range(levels - 1):
        c = cur.shape[1]
        kern = jnp.broadcast_to(k2d[None, None], (c, 1, KSIZE, KSIZE))
        blurred = jax.lax.conv_general_dilated(
            cur, kern, window_strides=(1, 1), padding=((2, 2), (2, 2)),
            dimension_numbers=("NCHW", "OIHW", "NCHW"),
            feature_group_count=c,
            precision=jax.lax.Precision.HIGHEST)
        n, c, h, w = blurred.shape
        cur = blurred.reshape(n, c, h // 2, 2, w // 2, 2).mean(axis=(3, 5))
        pyramid.append(cur)
    return pyramid


if __name__ == "__main__":
    key = jax.random.PRNGKey(0)
    N, C, H, W = 2, 4, 16, 16
    x = jax.random.normal(key, (N, C, H, W), dtype=jnp.float32)

    pyramid = enhanced_pyramid_layer(x, levels=LEVELS)
    pyramid = [jax.block_until_ready(p) for p in pyramid]

    expected = [(N, C, H >> i, W >> i) for i in range(LEVELS)]
    assert [tuple(p.shape) for p in pyramid] == expected, \
        [tuple(p.shape) for p in pyramid]

    ref = _reference_pyramid(x, levels=LEVELS)
    for lvl, (got, want) in enumerate(zip(pyramid, ref)):
        np.testing.assert_allclose(np.asarray(got), np.asarray(want),
                                   rtol=2e-2, atol=2e-2,
                                   err_msg=f"pyramid level {lvl}")

    print("KERNEL_OK")
</pallas_src>

<mosaic_0001>
module attributes {stable_mosaic.version = 11 : i64} {
  func.func @_pyramid_kernel(%arg0: i32, %arg1: memref<1x16x16xf32, #tpu.memory_space<vmem>>, %arg2: memref<8x16xf32, #tpu.memory_space<vmem>>, %arg3: memref<16x8xf32, #tpu.memory_space<vmem>>, %arg4: memref<4x8xf32, #tpu.memory_space<vmem>>, %arg5: memref<8x4xf32, #tpu.memory_space<vmem>>, %arg6: memref<2x4xf32, #tpu.memory_space<vmem>>, %arg7: memref<4x2xf32, #tpu.memory_space<vmem>>, %arg8: memref<1x8x8xf32, #tpu.memory_space<vmem>>, %arg9: memref<1x4x4xf32, #tpu.memory_space<vmem>>, %arg10: memref<1x2x2xf32, #tpu.memory_space<vmem>>) attributes {dimension_semantics = [#tpu.dimension_semantics<parallel>], iteration_bounds = array<i64: 8>, scalar_prefetch = 0 : i64, scratch_operands = 0 : i64, tpu.core_type = #tpu.core_type<tc>, window_params = [{transform_indices = @transform_0, window_bounds = array<i64: 1, 16, 16>}, {pipeline_mode = #tpu.pipeline_mode<synchronous>, transform_indices = @transform_1, window_bounds = array<i64: 8, 16>}, {pipeline_mode = #tpu.pipeline_mode<synchronous>, transform_indices = @transform_2, window_bounds = array<i64: 16, 8>}, {pipeline_mode = #tpu.pipeline_mode<synchronous>, transform_indices = @transform_3, window_bounds = array<i64: 4, 8>}, {pipeline_mode = #tpu.pipeline_mode<synchronous>, transform_indices = @transform_4, window_bounds = array<i64: 8, 4>}, {pipeline_mode = #tpu.pipeline_mode<synchronous>, transform_indices = @transform_5, window_bounds = array<i64: 2, 4>}, {pipeline_mode = #tpu.pipeline_mode<synchronous>, transform_indices = @transform_6, window_bounds = array<i64: 4, 2>}, {transform_indices = @transform_7, window_bounds = array<i64: 1, 8, 8>}, {transform_indices = @transform_8, window_bounds = array<i64: 1, 4, 4>}, {transform_indices = @transform_9, window_bounds = array<i64: 1, 2, 2>}]} {
    %c0 = arith.constant 0 : index
    %c0_0 = arith.constant 0 : index
    %c0_1 = arith.constant 0 : index
    %0 = vector.load %arg1[%c0, %c0_0, %c0_1] : memref<1x16x16xf32, #tpu.memory_space<vmem>>, vector<1x16x16xf32>
    %1 = vector.shape_cast %0 : vector<1x16x16xf32> to vector<16x16xf32>
    %c0_2 = arith.constant 0 : index
    %c0_3 = arith.constant 0 : index
    %2 = vector.load %arg2[%c0_2, %c0_3] : memref<8x16xf32, #tpu.memory_space<vmem>>, vector<8x16xf32>
    %c0_4 = arith.constant 0 : index
    %c0_5 = arith.constant 0 : index
    %3 = vector.load %arg3[%c0_4, %c0_5] : memref<16x8xf32, #tpu.memory_space<vmem>>, vector<16x8xf32>
    %cst = arith.constant dense<0.000000e+00> : vector<8x16xf32>
    %4 = tpu.matmul %2, %1, %cst {dimension_numbers = #tpu.dot_dimension_numbers<[1], [0], [0], [1], [0, 0, 1, 1], [], []>} : vector<8x16xf32>, vector<16x16xf32>, vector<8x16xf32> -> vector<8x16xf32>
    %cst_6 = arith.constant dense<0.000000e+00> : vector<8x8xf32>
    %5 = tpu.matmul %4, %3, %cst_6 {dimension_numbers = #tpu.dot_dimension_numbers<[1], [0], [0], [1], [0, 0, 1, 1], [], []>} : vector<8x16xf32>, vector<16x8xf32>, vector<8x8xf32> -> vector<8x8xf32>
    %c0_7 = arith.constant 0 : index
    %c0_8 = arith.constant 0 : index
    %c0_9 = arith.constant 0 : index
    %6 = vector.load %arg8[%c0_7, %c0_8, %c0_9] : memref<1x8x8xf32, #tpu.memory_space<vmem>>, vector<1x8x8xf32>
    %7 = vector.shape_cast %6 : vector<1x8x8xf32> to vector<8x8xf32>
    %8 = vector.shape_cast %5 : vector<8x8xf32> to vector<1x8x8xf32>
    tpu.vector_store %arg8[%c0_7, %c0_8, %c0_9], %8 {strides = array<i32>} : memref<1x8x8xf32, #tpu.memory_space<vmem>>, vector<1x8x8xf32>,
    %c0_10 = arith.constant 0 : index
    %c0_11 = arith.constant 0 : index
    %9 = vector.load %arg4[%c0_10, %c0_11] : memref<4x8xf32, #tpu.memory_space<vmem>>, vector<4x8xf32>
    %c0_12 = arith.constant 0 : index
    %c0_13 = arith.constant 0 : index
    %10 = vector.load %arg5[%c0_12, %c0_13] : memref<8x4xf32, #tpu.memory_space<vmem>>, vector<8x4xf32>
    %cst_14 = arith.constant dense<0.000000e+00> : vector<4x8xf32>
    %11 = tpu.matmul %9, %5, %cst_14 {dimension_numbers = #tpu.dot_dimension_numbers<[1], [0], [0], [1], [0, 0, 1, 1], [], []>} : vector<4x8xf32>, vector<8x8xf32>, vector<4x8xf32> -> vector<4x8xf32>
    %cst_15 = arith.constant dense<0.000000e+00> : vector<4x4xf32>
    %12 = tpu.matmul %11, %10, %cst_15 {dimension_numbers = #tpu.dot_dimension_numbers<[1], [0], [0], [1], [0, 0, 1, 1], [], []>} : vector<4x8xf32>, vector<8x4xf32>, vector<4x4xf32> -> vector<4x4xf32>
    %c0_16 = arith.constant 0 : index
    %c0_17 = arith.constant 0 : index
    %c0_18 = arith.constant 0 : index
    %13 = vector.load %arg9[%c0_16, %c0_17, %c0_18] : memref<1x4x4xf32, #tpu.memory_space<vmem>>, vector<1x4x4xf32>
    %14 = vector.shape_cast %13 : vector<1x4x4xf32> to vector<4x4xf32>
    %15 = vector.shape_cast %12 : vector<4x4xf32> to vector<1x4x4xf32>
    tpu.vector_store %arg9[%c0_16, %c0_17, %c0_18], %15 {strides = array<i32>} : memref<1x4x4xf32, #tpu.memory_space<vmem>>, vector<1x4x4xf32>,
    %c0_19 = arith.constant 0 : index
    %c0_20 = arith.constant 0 : index
    %16 = vector.load %arg6[%c0_19, %c0_20] : memref<2x4xf32, #tpu.memory_space<vmem>>, vector<2x4xf32>
    %c0_21 = arith.constant 0 : index
    %c0_22 = arith.constant 0 : index
    %17 = vector.load %arg7[%c0_21, %c0_22] : memref<4x2xf32, #tpu.memory_space<vmem>>, vector<4x2xf32>
    %cst_23 = arith.constant dense<0.000000e+00> : vector<2x4xf32>
    %18 = tpu.matmul %16, %12, %cst_23 {dimension_numbers = #tpu.dot_dimension_numbers<[1], [0], [0], [1], [0, 0, 1, 1], [], []>} : vector<2x4xf32>, vector<4x4xf32>, vector<2x4xf32> -> vector<2x4xf32>
    %cst_24 = arith.constant dense<0.000000e+00> : vector<2x2xf32>
    %19 = tpu.matmul %18, %17, %cst_24 {dimension_numbers = #tpu.dot_dimension_numbers<[1], [0], [0], [1], [0, 0, 1, 1], [], []>} : vector<2x4xf32>, vector<4x2xf32>, vector<2x2xf32> -> vector<2x2xf32>
    %c0_25 = arith.constant 0 : index
    %c0_26 = arith.constant 0 : index
    %c0_27 = arith.constant 0 : index
    %20 = vector.load %arg10[%c0_25, %c0_26, %c0_27] : memref<1x2x2xf32, #tpu.memory_space<vmem>>, vector<1x2x2xf32>
    %21 = vector.shape_cast %20 : vector<1x2x2xf32> to vector<2x2xf32>
    %22 = vector.shape_cast %19 : vector<2x2xf32> to vector<1x2x2xf32>
    tpu.vector_store %arg10[%c0_25, %c0_26, %c0_27], %22 {strides = array<i32>} : memref<1x2x2xf32, #tpu.memory_space<vmem>>, vector<1x2x2xf32>,
    return
  }
  func.func @transform_0(%arg0: i32) -> (i32, i32, i32) {
    %c0_i32 = arith.constant 0 : i32
    %c0_i32_0 = arith.constant 0 : i32
    %c0_i32_1 = arith.constant 0 : i32
    return %arg0, %c0_i32, %c0_i32_0 : i32, i32, i32
  }
  func.func @transform_1(%arg0: i32) -> (i32, i32) {
    %c0_i32 = arith.constant 0 : i32
    %c0_i32_0 = arith.constant 0 : i32
    %c0_i32_1 = arith.constant 0 : i32
    return %c0_i32, %c0_i32_0 : i32, i32
  }
  func.func @transform_2(%arg0: i32) -> (i32, i32) {
    %c0_i32 = arith.constant 0 : i32
    %c0_i32_0 = arith.constant 0 : i32
    %c0_i32_1 = arith.constant 0 : i32
    return %c0_i32, %c0_i32_0 : i32, i32
  }
  func.func @transform_3(%arg0: i32) -> (i32, i32) {
    %c0_i32 = arith.constant 0 : i32
    %c0_i32_0 = arith.constant 0 : i32
    %c0_i32_1 = arith.constant 0 : i32
    return %c0_i32, %c0_i32_0 : i32, i32
  }
  func.func @transform_4(%arg0: i32) -> (i32, i32) {
    %c0_i32 = arith.constant 0 : i32
    %c0_i32_0 = arith.constant 0 : i32
    %c0_i32_1 = arith.constant 0 : i32
    return %c0_i32, %c0_i32_0 : i32, i32
  }
  func.func @transform_5(%arg0: i32) -> (i32, i32) {
    %c0_i32 = arith.constant 0 : i32
    %c0_i32_0 = arith.constant 0 : i32
    %c0_i32_1 = arith.constant 0 : i32
    return %c0_i32, %c0_i32_0 : i32, i32
  }
  func.func @transform_6(%arg0: i32) -> (i32, i32) {
    %c0_i32 = arith.constant 0 : i32
    %c0_i32_0 = arith.constant 0 : i32
    %c0_i32_1 = arith.constant 0 : i32
    return %c0_i32, %c0_i32_0 : i32, i32
  }
  func.func @transform_7(%arg0: i32) -> (i32, i32, i32) {
    %c0_i32 = arith.constant 0 : i32
    %c0_i32_0 = arith.constant 0 : i32
    %c0_i32_1 = arith.constant 0 : i32
    return %arg0, %c0_i32, %c0_i32_0 : i32, i32, i32
  }
  func.func @transform_8(%arg0: i32) -> (i32, i32, i32) {
    %c0_i32 = arith.constant 0 : i32
    %c0_i32_0 = arith.constant 0 : i32
    %c0_i32_1 = arith.constant 0 : i32
    return %arg0, %c0_i32, %c0_i32_0 : i32, i32, i32
  }
  func.func @transform_9(%arg0: i32) -> (i32, i32, i32) {
    %c0_i32 = arith.constant 0 : i32
    %c0_i32_0 = arith.constant 0 : i32
    %c0_i32_1 = arith.constant 0 : i32
    return %arg0, %c0_i32, %c0_i32_0 : i32, i32, i32
  }
}

</mosaic_0001>

<bundles_post_ra>
// kernel: tpu_custom_call.1
= control target key start
LH: loop header
LB: loop body
LE: loop exit
PB: predicated region body
PF: predicated region fallthrough
CT: control target
= control target key end

     0   :  { %15 = vsyncpa [#allocation3], 0  ;;  %s1434_s0 = inlined_call_operand.hbm [shape: f32[8,16,16], index: 0, kind: input, shape index: {}]   ;;  %s1435_s1 = inlined_call_operand.vmem [shape: f32[8,16], index: 1, kind: input, shape index: {}]   ;;  %s1436_s2 = inlined_call_operand.vmem [shape: f32[16,8], index: 2, kind: input, shape index: {}]   ;;  %s1437_s3 = inlined_call_operand.vmem [shape: f32[4,8], index: 3, kind: input, shape index: {}]   ;;  %s1438_s4 = inlined_call_operand.vmem [shape: f32[8,4], index: 4, kind: input, shape index: {}]   ;;  %s1439_s5 = inlined_call_operand.vmem [shape: f32[2,4], index: 5, kind: input, shape index: {}]   ;;  %s1440_s6 = inlined_call_operand.vmem [shape: f32[4,2], index: 6, kind: input, shape index: {}]   ;;  %s1441_s7 = inlined_call_operand.hbm [shape: f32[8,8,8], index: 7, kind: output, shape index: {0}]   ;;  %s1442_s8 = inlined_call_operand.vmem [shape: f32[8,4,4], index: 8, kind: output, shape index: {1}]   ;;  %s1443_s9 = inlined_call_operand.vmem [shape: f32[8,2,2], index: 9, kind: output, shape index: {2}]  }
   0x1   :  { %17 = vsyncpa [#allocation3 + $0x1], 0 }
   0x2   :  { %18 = vsyncpa [#allocation4], 0 }
   0x3   :  { %20 = vsyncpa [#allocation4 + $0x1], 0  ;;  %s1252_s30 = smov 0   ;;  %s1254_s10 = smov 0  }
   0x4   :  { %s1256_s11 = smov 0   ;;  %s1258_s12 = smov 0  }
   0x5 LB: > { %1447 = sst [smem:[#allocation8_spill]] %s1190_s11  ;;  %s1273_s13 = sadd.s32 4294967295, %s1194_s12   ;;  %s1194_s12 = sphi %s1258_s12, %s1461_s12   ;;  %s1190_s11 = sphi %s1256_s11, %s1458_s11   ;;  %s1186_s10 = sphi %s1254_s10, %s1460_s10   ;;  %s1182_s30 = sphi %s1252_s30, %s1459_s30  }
   0x6   : > { %s980_s14 = sadd.s32 4294967294, %s1194_s12   ;;  %s1277_s15 = sadd.s32 1, %s1194_s12  }
   0x7   : > { %s33_s16 = sadd.s32 1, %s1190_s11  ;;  %s30_s17 = ssub.s32 %s1194_s12, %s1277_s15 }
   0x8   : > { %p40_p0 = scmp.ne.s32.totalorder %s1190_s11, %s1186_s10  ;;  %p31_p1 = scmp.eq.s32.totalorder %s30_s17, 0 }
   0x9   : > { %p41_p2 = scmp.eq.s32.totalorder %s1194_s12, 0  ;;  %p46_p3 = scmp.ne.s32.totalorder %s1186_s10, %s1182_s30 }
   0xa   : > { %p47_p4 = scmp.eq.s32.totalorder %s1273_s13, 0  ;;  %p196_p7 = scmp.eq.s32.totalorder %s1273_s13, 7 }
   0xb   : > { %s1289_s18 = scalar_select %p31_p1, %s1190_s11, %s33_s16  }
   0xc   : > { %p1291_p5 = por %p41_p2, %p40_p0  ;;  %p1295_p6 = por %p47_p4, %p46_p3 }
   0xd   : > { %1448 = sst [smem:[#allocation9_spill]] %s1289_s18  ;;  %p202_p8 = scmp.eq.s32.totalorder %s980_s14, 7 }
   0xe   : > { %s1450_s20 = scalar_select %p1295_p6, 1, 0 }
   0xf   : > { %p1064_p9 = scmp.lt.s32.totalorder %s1194_s12, 8  ;;  %p1301_p10 = por %p196_p7, %p40_p0 }
  0x10   : > { %p1305_p11 = por %p202_p8, %p46_p3  ;;  %s292_s23 = sand.u32 1, %s1190_s11  }
  0x11   : > { %s1451_s21 = scalar_select %p1301_p10, 1, 0 }
  0x12   : > { %s1452_s22 = scalar_select %p1305_p11, 1, 0 }
  0x13   : > { %s1003_s24 = sshll.u32 %s1194_s12, 8  ;;  %s983_s25 = sshll.u32 %s292_s23, 4 }
  0x14   : > { %s1314_s28 = scalar_lea.hbm %s1434_s0, %s1003_s24  ;;  %s296_s29 = scalar_lea.vmem [#allocation2], %s983_s25 }
  0x15   : > { %s303_s14 = sshll.u32 %s296_s29, 4  ;;  %p1318_p12 = pnand %p1064_p9, %p1291_p5  ;;  %s1322_s14 = int_to_ptr.vmem [resolvable:$true] %s303_s14 }
  0x16   : > { %s1324_s17 = scalar_lea.sflag [#allocation3], %s292_s23  ;;  %s1102_s18 = scalar_lea.hbm %s1314_s28, 256 }
  0x17   : > { %p1103_p13 = scmp.ne.s32.totalorder %s1314_s28, %s1102_s18  ;;  %p1104_p0 = pneg %p1318_p12 }
  0x18   : > { %s1107_s25 = scalar_lea.hbm %s1434_s0, 2048  ;;  %p1108_p3 = scmp.lt.s32.totalorder %s1314_s28, %s1434_s0 }
  0x19   : > { %p1105_p1 = pnand %p1104_p0, %p1103_p13  ;;  %p1109_p4 = scmp.lt.s32.totalorder %s1107_s25, %s1102_s18 }
  0x1b   : > { %p1106_p2 = pneg %p1105_p1  ;;  %p1110_p5 = por %p1109_p4, %p1108_p3 }
  0x1d   : > { %p1111_p7 = pnand %p1110_p5, %p1106_p2 }
  0x1f   : > { %1114 = shalt.err (!%p1111_p7)
}
  0x20   : > { %s1115_s23 = scalar_lea.vmem %s1322_s14, 256  ;;  %s1196_s29 = smov [#allocation2]  }
  0x21   : > { %p1116_p8 = scmp.ne.s32.totalorder %s1322_s14, %s1115_s23  ;;  %s1120_s11 = sshll.u32 %s1196_s29, 4  ;;  %s1121_s11 = int_to_ptr.vmem [resolvable:$false] %s1120_s11 }
  0x22   : > { %s1122_s24 = scalar_lea.vmem %s1121_s11, 512  ;;  %p1123_p1 = scmp.lt.s32.totalorder %s1322_s14, %s1121_s11 }
  0x23   : > { %p1118_p9 = pnand %p1116_p8, %p1104_p0  ;;  %p1124_p11 = scmp.lt.s32.totalorder %s1122_s24, %s1115_s23 }
  0x25   : > { %p1119_p13 = pneg %p1118_p9  ;;  %p1125_p10 = por %p1124_p11, %p1123_p1 }
  0x27   : > { %p1126_p6 = pnand %p1125_p10, %p1119_p13 }
  0x29   : > { %1129 = shalt.err (!%p1126_p6)
}
  0x2a   : > { %s1197_s18 = smov 128   ;;  %s1198_s26 = smov 8  }
  0x2b   : > { %1059 = dma.hbm_to_vmem [thread:$0]  (!%p1318_p12), %s1314_s28, 256, %s1322_s14, %s1324_s17, %s1197_s18, %s1197_s18, %s1198_s26  }
  0x2c   : > { %p986_p0 = scmp.ge.s32.totalorder %s1194_s12, 1  ;;  %p311_p2 = scmp.lt.s32.totalorder %s1194_s12, 9 }
  0x2e   : > { %p312_p3 = pnand %p986_p0, %p311_p2 }
  0x2f   : > { %s1348_s11 = sand.u32 (!%p312_p3), 1, %s1186_s10   ;;  %p1454_p6 = scmp.ne.s32.totalorder (!%p312_p3), %s1450_s20, 0 }
  0x30   : > { %315 = sbr.rel (%p312_p3) target bundleno = 1222 (0x4c6), region = 48  ;;  %s987_s25 = sshll.u32 (!%p312_p3), %s1348_s11, 4 }
  0x31   : > { %s318_s19 = scalar_lea.sflag (!%p312_p3), [#allocation3], %s1348_s11  ;;  %s321_s27 = scalar_lea.vmem (!%p312_p3), [#allocation2], %s987_s25 }
  0x35   : > { %1173 = dma.done.wait (%p1454_p6), %s318_s19, 256  }
  0x36   : > { %1175 = vsyncadd (%p1454_p6), %s318_s19, 4294967040  ;;  %v1199_v0 = vmov 0.0   ;;  %vm1200_vm0 = vmmov 0   ;;  %v373_v1 = vld [vmem:[%s321_s27 + $0x8] sm:$0xff]  ;;  %v372_v2 = vld [vmem:[%s321_s27] sm:$0xff]  ;;  %vm377_vm1 = vcmask 130048  }
  0x37   : > { %1018 = vmatprep.subr.mxu0 %v1199_v0  ;;  %1022 = vmatprep.mubr.msk.f32.mxu0 %vm1200_vm0, %v1199_v0  ;;  %v374_v3 = vld [vmem:[%s1435_s1] sm:$0xff]  ;;  %v376_v4 = vld [vmem:[%s1436_s2 + $0x8] sm:$0xff]  ;;  %s988_s29 = sshll.u32 %s1348_s11, 3  ;;  %vm524_vm2 = vcmask 64512   ;;  %vm682_vm3 = vcmask 1043456   ;;  %p364_p10 = scmp.lt.s32.totalorder %s1273_s13, 7 }
  0x38   : > { %1025 = vmatprep.subr.mxu1 %v1199_v0  ;;  %1029 = vmatprep.mubr.msk.f32.mxu1 %vm1200_vm0, %v1199_v0  ;;  %v375_v5 = vld [vmem:[%s1436_s2] sm:$0xff]  ;;  %s1373_s26 = scalar_lea.vmem [#allocation5], %s988_s29  ;;  %vm674_vm4 = vcmask 27648   ;;  %vm678_vm5 = vcmask 31744   ;;  %s1000_s18 = sshll.u32 %s1273_s13, 7 }
  0x39   : > { %1019 = vmatpush3.msra.mxu0 %v373_v1  ;;  %1026 = vmatpush3.msra.mxu1 %v376_v4  ;;  %v526_v8 = vld [vmem:[%s1437_s3] sm:$0xf]  ;;  %s1386_s14 = scalar_select %p364_p10, %s1273_s13, 7 }
  0x3a   : > { %1020 = vmatprep.subr.mxu0 %v1199_v0  ;;  %1027 = vmatprep.subr.mxu1 %v1199_v0  ;;  %v527_v11 = vld [vmem:[%s1438_s4] sm:$0xff]  ;;  %s856_s25 = sshll.u32 %s1373_s26, 4  ;;  %s854_s28 = scalar_lea.hbm %s1441_s7, %s1000_s18  ;;  %s857_s25 = int_to_ptr.vmem [resolvable:$true] %s856_s25 }
  0x3b   : > { %1021 = vmatpush3.msra.mxu0 %v372_v2  ;;  %1028 = vmatpush3.msra.mxu1 %v375_v5  ;;  %v677_v14 = vld [vmem:[%s1440_s6] sm:$0xf]  ;;  %s989_s16 = sshll.u32 %s1386_s14, 2  ;;  %s1130_s17 = scalar_lea.vmem %s857_s25, 128 }
  0x3c   : > { %1023 = vmatmul.mubr.msk.f32.vlgmr.msra.gmra.mxu0 %vm377_vm1, %v374_v3  ;;  %1032 = vmatprep.subr.mxu0 %v1199_v0  ;;  %s367_s23 = scalar_lea.vmem %s1442_s8, %s989_s16  ;;  %v676_v15 = vld [vmem:[%s1439_s5] sm:$0x3]  ;;  %s835_s16 = scalar_lea.sflag [#allocation4], %s1348_s11 }
  0x3d   : > { %1034 = vmatprep.mubr.msk.f32.mxu0 %vm1200_vm0, %v1199_v0  ;;  %1037 = vmatprep.subr.mxu1 %v1199_v0  ;;  %p1131_p11 = scmp.ne.s32.totalorder %s857_s25, %s1130_s17  ;;  %p1455_p12 = scmp.ne.s32.totalorder %s1451_s21, 0 }
  0x3e   : > { %s1201_s20 = smov [#allocation5]  }
  0x3f   : > { %p1132_p4 = pnand %p1131_p11, %p1455_p12 }
  0x41   : > { %p1133_p5 = pneg %p1132_p4 }
  0xfc   : > { %v447_v6 = vpop.f32.mrf.mxu0 }
  0xfd   : > { %1030 = vmatmul.mubr.msk.f32.vlgmr.msra.gmra.mxu1 %vm377_vm1, %v447_v6 }
  0xfe   : > { %v1024_v7 = vpop.f32.mrf.mxu0  ;;  %1039 = vmatprep.mubr.msk.f32.mxu1 %vm1200_vm0, %v1199_v0  ;;  %1038 = vmatpush3.msra.mxu1 %v527_v11 }
  0xff   : > { %1047 = vmatprep.subr.mxu1 %v1199_v0 }
 0x1bd   : > { %v520_v9 = vpop.f32.mrf.mxu1 }
 0x1be   : > { %525 = vst.msk [vmem:[%s1373_s26] sm:$0xff] %vm524_vm2, %v520_v9  ;;  %1033 = vmatpush3.msra.mxu0 %v520_v9 }
 0x1bf   : > { %v1031_v10 = vpop.f32.mrf.mxu1  ;;  %1035 = vmatmul.mubr.msk.f32.vlgmr.msra.gmra.mxu0 %vm524_vm2, %v526_v8  ;;  %1042 = vmatprep.subr.mxu0 %v1199_v0 }
 0x1c0   : > { %1044 = vmatprep.mubr.msk.f32.mxu0 %vm1200_vm0, %v1199_v0 }
 0x27f   : > { %v597_v12 = vpop.f32.mrf.mxu0 }
 0x280   : > { %1040 = vmatmul.mubr.msk.f32.vlgmr.msra.gmra.mxu1 %vm524_vm2, %v597_v12 }
 0x281   : > { %v1036_v13 = vpop.f32.mrf.mxu0  ;;  %1049 = vmatprep.mubr.msk.f32.mxu1 %vm1200_vm0, %v1199_v0  ;;  %1048 = vmatpush3.msk.msra.mxu1 %vm682_vm3, %v677_v14 }
 0x340   : > { %v670_v16 = vpop.f32.mrf.mxu1 }
 0x341   : > { %675 = vst.msk [vmem:[%s367_s23] sm:$0xf] %vm674_vm4, %v670_v16  ;;  %1043 = vmatpush3.msk.msra.mxu0 %vm682_vm3, %v670_v16  ;;  %s1134_s23 = sshll.u32 %s1201_s20, 4  ;;  %s1135_s23 = int_to_ptr.vmem [resolvable:$false] %s1134_s23 }
 0x342   : > { %v1041_v17 = vpop.f32.mrf.mxu1  ;;  %1045 = vmatmul.mubr.msk.f32.vlgmr.msra.gmra.mxu0 %vm678_vm5, %v676_v15  ;;  %s1136_s29 = scalar_lea.vmem %s1135_s23, 256  ;;  %p1137_p7 = scmp.lt.s32.totalorder %s857_s25, %s1135_s23 }
 0x343   : > { %p1138_p8 = scmp.lt.s32.totalorder %s1136_s29, %s1130_s17 }
 0x345   : > { %p1139_p9 = por %p1138_p8, %p1137_p7 }
 0x347   : > { %p1140_p13 = pnand %p1139_p9, %p1133_p5 }
 0x402   : > { %v752_v18 = vpop.f32.mrf.mxu0 }
 0x403   : > { %1050 = vmatmul.mubr.msk.f32.vlgmr.msra.gmra.mxu1 %vm678_vm5, %v752_v18 }
 0x404   : > { %v1046_v19 = vpop.f32.mrf.mxu0 }
 0x405   : > { %1143 = shalt.err (!%p1140_p13)
}
 0x406   : > { %s1144_s13 = scalar_lea.hbm %s854_s28, 128  ;;  %s1148_s24 = scalar_lea.hbm %s1441_s7, 1024 }
 0x407   : > { %p1145_p1 = scmp.ne.s32.totalorder %s854_s28, %s1144_s13  ;;  %p1149_p3 = scmp.lt.s32.totalorder %s854_s28, %s1441_s7 }
 0x408   : > { %p1150_p6 = scmp.lt.s32.totalorder %s1148_s24, %s1144_s13 }
 0x409   : > { %p1146_p0 = pnand %p1145_p1, %p1455_p12 }
 0x40a   : > { %p1151_p10 = por %p1150_p6, %p1149_p3 }
 0x40b   : > { %p1147_p2 = pneg %p1146_p0 }
 0x40d   : > { %p1152_p11 = pnand %p1151_p10, %p1147_p2 }
 0x40f   : > { %1155 = shalt.err (!%p1152_p11)
}
 0x410   : > { %1054 = dma.vmem_to_hbm [thread:$0]  (%p1455_p12), %s857_s25, 128, %s854_s28, %s835_s16   ;;  %vm832_vm6 = vcmask 9216  }
 0x411   : > { %s990_s27 = sshll.u32 %s1386_s14, 1 }
 0x412   : > { %s371_s23 = scalar_lea.vmem %s1443_s9, %s990_s27 }
 0x4c3   : > { %v828_v20 = vpop.f32.mrf.mxu1 }
 0x4c4   : > { %833 = vst.msk [vmem:[%s371_s23] sm:$0x3] %vm832_vm6, %v828_v20 }
 0x4c5   : > { %v1051_v21 = vpop.f32.mrf.mxu1 }
 0x4c6 PF: > { %p1065_p4 = scmp.ge.s32.totalorder %s1194_s12, 2  ;;  %s874_s29 = sand.u32 1, %s1182_s30  }
 0x4c7   : > { %p1456_p5 = scmp.ne.s32.totalorder %s1452_s22, 0  ;;  %s875_s21 = scalar_lea.sflag [#allocation4], %s874_s29 }
 0x4c9   : > { %p1061_p7 = pnand %p1065_p4, %p1456_p5 }
 0x4cb   : > { %p1062_p8 = pneg %p1061_p7 }
 0x4cd   : > { %1177 = dma.done.wait (%p1062_p8), %s875_s21, 128  }
 0x4ce   : > { %1179 = vsyncadd (%p1062_p8), %s875_s21, 4294967168  ;;  %s1457_s14 = sld [smem:[#allocation8_spill]]  ;;  %p23_p12 = scmp.ge.s32.totalorder %s1277_s15, 10  }
 0x4cf   : > { %s1458_s11 = sld [smem:[#allocation9_spill]]  ;;  %s1459_s30 = smov %s1186_s10 }
 0x4d0   : > { %s1461_s12 = smov %s1277_s15  ;;  %25 = sbr.rel (!%p23_p12) target bundleno = 5 (0x5), region = 117 }
 0x4d4   : > { %s1460_s10 = smov %s1457_s14 }
 0x4d5   :  { %894 = vsyncpa [#allocation3], 1 }
 0x4d6   :  { %896 = vsyncpa [#allocation3 + $0x1], 1 }
 0x4d7   :  { %897 = vsyncpa [#allocation4], 1 }
 0x4d8   :  { %899 = vsyncpa [#allocation4 + $0x1], 1 }

</bundles_post_ra>
